<compile_context>
chip_gen: v7x
topology: tpu7x:2x2x1
jax: 0.10.0
libtpu: 0.0.40
codegen_flags: <defaults>
</compile_context>

<pallas_src>
import jax
import jax.numpy as jnp
from jax import lax
from jax.experimental import pallas as pl
from jax.experimental.pallas import tpu as pltpu


def _linear_sigmoid_kernel(x_ref, w_ref, b_ref, o_ref):
    # x_ref: (bm, F), w_ref: (C, F) torch-Linear layout, b_ref: (1, C), o_ref: (bm, C)
    z = lax.dot_general(
        x_ref[...], w_ref[...],
        dimension_numbers=(((1,), (1,)), ((), ())),   # contract F with F (trans-B)
        preferred_element_type=jnp.float32,           # f32 MXU accumulation
    )
    z = z + b_ref[...].astype(jnp.float32)            # broadcast (1, C) -> (bm, C)
    o_ref[...] = jax.nn.sigmoid(z).astype(o_ref.dtype)


def _pick_batch_tile(B: int) -> int:
    # Whole problem in one block while small; 512-row tiles once it scales
    # (~85% of HBM roofline per tile-size measurements, comfortably inside the
    # 16/32 MiB scoped-VMEM defaults on v5e/v6e/v7x for typical F).
    return B if B <= 512 else 512


def mlp_linear_sample_forward(x, weight, bias):
    """x: (B, ...) any trailing shape; weight: (C, F) torch-Linear layout; bias: (C,)."""
    B = x.shape[0]
    x2d = x.reshape(B, -1)                 # glue: torch .view(B, -1); no dtype cast
    F = x2d.shape[1]
    C = weight.shape[0]
    b2d = bias.reshape(1, C)

    bm = _pick_batch_tile(B)
    grid = (pl.cdiv(B, bm),)

    itemsize = jnp.dtype(x2d.dtype).itemsize
    cost = pl.CostEstimate(
        flops=2 * B * F * C,
        transcendentals=B * C,                         # one exp per sigmoid output
        bytes_accessed=itemsize * (B * F + C * F + C + B * C),
    )

    out = pl.pallas_call(
        _linear_sigmoid_kernel,
        out_shape=jax.ShapeDtypeStruct((B, C), x2d.dtype),
        grid=grid,
        in_specs=[
            pl.BlockSpec((bm, F), lambda i: (i, 0)),   # batch-tiled activations
            pl.BlockSpec((C, F), lambda i: (0, 0)),    # weight VMEM-resident, native layout
            pl.BlockSpec((1, C), lambda i: (0, 0)),    # bias VMEM-resident
        ],
        out_specs=pl.BlockSpec((bm, C), lambda i: (i, 0)),
        compiler_params=pltpu.CompilerParams(
            dimension_semantics=("parallel",),         # megacore splits the batch axis
        ),
        cost_estimate=cost,
    )(x2d, weight, b2d)
    return out


if __name__ == "__main__":
    # Deterministic parameter init (synthetic; mirrors nn.Linear shapes).
    batch = 8
    input_size = 32
    num_classes = 2

    key = jax.random.PRNGKey(0)
    kx, kw, kb = jax.random.split(key, 3)

    x = jax.random.normal(kx, (batch, input_size), dtype=jnp.float32)
    # nn.Linear(input_size, num_classes): weight (num_classes, input_size), bias (num_classes,)
    bound = 1.0 / (input_size ** 0.5)
    weight = jax.random.uniform(kw, (num_classes, input_size),
                                minval=-bound, maxval=bound, dtype=jnp.float32)
    bias = jax.random.uniform(kb, (num_classes,),
                              minval=-bound, maxval=bound, dtype=jnp.float32)

    out = mlp_linear_sample_forward(x, weight, bias)
    out = jax.block_until_ready(out)

    # Reference check in plain JAX.
    ref = jax.nn.sigmoid(x.reshape(batch, -1) @ weight.T + bias)
    assert out.shape == (batch, num_classes)
    assert jnp.allclose(out, ref, atol=1e-5, rtol=1e-5)

    print("KERNEL_OK")
</pallas_src>

<mosaic_0001>
module attributes {stable_mosaic.version = 11 : i64} {
  func.func @_linear_sigmoid_kernel(%arg0: i32, %arg1: memref<8x32xf32, #tpu.memory_space<vmem>>, %arg2: memref<2x32xf32, #tpu.memory_space<vmem>>, %arg3: memref<1x2xf32, #tpu.memory_space<vmem>>, %arg4: memref<8x2xf32, #tpu.memory_space<vmem>>) attributes {dimension_semantics = [#tpu.dimension_semantics<parallel>], iteration_bounds = array<i64: 1>, scalar_prefetch = 0 : i64, scratch_operands = 0 : i64, tpu.core_type = #tpu.core_type<tc>, window_params = [{transform_indices = @transform_0, window_bounds = array<i64: 8, 32>}, {pipeline_mode = #tpu.pipeline_mode<synchronous>, transform_indices = @transform_1, window_bounds = array<i64: 2, 32>}, {pipeline_mode = #tpu.pipeline_mode<synchronous>, transform_indices = @transform_2, window_bounds = array<i64: 1, 2>}, {transform_indices = @transform_3, window_bounds = array<i64: 8, 2>}]} {
    %c0 = arith.constant 0 : index
    %c0_0 = arith.constant 0 : index
    %0 = vector.load %arg1[%c0, %c0_0] : memref<8x32xf32, #tpu.memory_space<vmem>>, vector<8x32xf32>
    %c0_1 = arith.constant 0 : index
    %c0_2 = arith.constant 0 : index
    %1 = vector.load %arg2[%c0_1, %c0_2] : memref<2x32xf32, #tpu.memory_space<vmem>>, vector<2x32xf32>
    %cst = arith.constant dense<0.000000e+00> : vector<8x2xf32>
    %2 = tpu.matmul %0, %1, %cst {dimension_numbers = #tpu.dot_dimension_numbers<[1], [1], [0], [0], [0, 0, 1, 0], [], []>} : vector<8x32xf32>, vector<2x32xf32>, vector<8x2xf32> -> vector<8x2xf32>
    %c0_3 = arith.constant 0 : index
    %c0_4 = arith.constant 0 : index
    %3 = vector.load %arg3[%c0_3, %c0_4] : memref<1x2xf32, #tpu.memory_space<vmem>>, vector<1x2xf32>
    %4 = vector.broadcast %3 : vector<1x2xf32> to vector<8x2xf32>
    %5 = arith.addf %2, %4 : vector<8x2xf32>
    %6 = arith.negf %5 : vector<8x2xf32>
    %7 = math.exp %6 : vector<8x2xf32>
    %cst_5 = arith.constant 1.000000e+00 : f32
    %8 = vector.broadcast %cst_5 : f32 to vector<8x2xf32>
    %9 = arith.addf %8, %7 : vector<8x2xf32>
    %10 = arith.divf %8, %9 : vector<8x2xf32>
    %c0_6 = arith.constant 0 : index
    %c0_7 = arith.constant 0 : index
    %11 = vector.load %arg4[%c0_6, %c0_7] : memref<8x2xf32, #tpu.memory_space<vmem>>, vector<8x2xf32>
    tpu.vector_store %arg4[%c0_6, %c0_7], %10 {strides = array<i32>} : memref<8x2xf32, #tpu.memory_space<vmem>>, vector<8x2xf32>,
    return
  }
  func.func @transform_0(%arg0: i32) -> (i32, i32) {
    %c0_i32 = arith.constant 0 : i32
    %c0_i32_0 = arith.constant 0 : i32
    return %arg0, %c0_i32 : i32, i32
  }
  func.func @transform_1(%arg0: i32) -> (i32, i32) {
    %c0_i32 = arith.constant 0 : i32
    %c0_i32_0 = arith.constant 0 : i32
    %c0_i32_1 = arith.constant 0 : i32
    return %c0_i32, %c0_i32_0 : i32, i32
  }
  func.func @transform_2(%arg0: i32) -> (i32, i32) {
    %c0_i32 = arith.constant 0 : i32
    %c0_i32_0 = arith.constant 0 : i32
    %c0_i32_1 = arith.constant 0 : i32
    return %c0_i32, %c0_i32_0 : i32, i32
  }
  func.func @transform_3(%arg0: i32) -> (i32, i32) {
    %c0_i32 = arith.constant 0 : i32
    %c0_i32_0 = arith.constant 0 : i32
    return %arg0, %c0_i32 : i32, i32
  }
}

</mosaic_0001>

<bundles_post_ra>
// kernel: tpu_custom_call.1
= control target key start
LH: loop header
LB: loop body
LE: loop exit
PB: predicated region body
PF: predicated region fallthrough
CT: control target
= control target key end

     0   :  { %8 = vsyncpa [#allocation3], 0  ;;  %s167_s12 = smov [#allocation2]   ;;  %s211_s0 = inlined_call_operand.hbm [shape: f32[8,32], index: 0, kind: input, shape index: {}]   ;;  %s212_s1 = inlined_call_operand.vmem [shape: f32[2,32], index: 1, kind: input, shape index: {}]   ;;  %s213_s2 = inlined_call_operand.vmem [shape: f32[1,2], index: 2, kind: input, shape index: {}]   ;;  %s214_s3 = inlined_call_operand.vmem [shape: f32[8,2], index: 3, kind: output, shape index: {}]  }
   0x1   :  { %s15_s13 = sshll.u32 %s167_s12, 4  ;;  %s143_s16 = scalar_lea.hbm %s211_s0, 128  ;;  %s16_s13 = int_to_ptr.vmem [resolvable:$true] %s15_s13 }
   0x2   :  { %p144_p0 = scmp.ne.s32.totalorder %s211_s0, %s143_s16  ;;  %p147_p1 = scmp.lt.u32.totalorder %s143_s16, %s211_s0 }
   0x4   :  { %p149_p2 = pnand %p147_p1, %p144_p0 }
   0x6   :  { %152 = shalt.err (!%p149_p2)
}
   0x7   :  { %s153_s21 = scalar_lea.vmem %s16_s13, 128  ;;  %p158_p4 = scmp.lt.s32.totalorder %s16_s13, %s16_s13 }
   0x8   :  { %p154_p3 = scmp.ne.s32.totalorder %s16_s13, %s153_s21  ;;  %p159_p5 = scmp.lt.s32.totalorder %s153_s21, %s153_s21 }
   0xa   :  { %p160_p6 = por %p159_p5, %p158_p4 }
   0xc   :  { %p161_p7 = pnand %p160_p6, %p154_p3 }
   0xe   :  { %164 = shalt.err (!%p161_p7)
}
   0xf   :  { %18 = dma.hbm_to_vmem [thread:$0]  %s211_s0, 128, %s16_s13, [#allocation3]  }
  0x10   :  { %165 = dma.done.wait [#allocation3], 128  }
  0x11   :  { %166 = vsyncadd [#allocation3], 4294967168  ;;  %v168_v0 = vmov 0.0   ;;  %vm169_vm0 = vmmov 0   ;;  %vm35_vm1 = vcmask 261120   ;;  %v26_v2 = vld [vmem:[#allocation2] sm:$0xff] }
  0x12   :  { %131 = vmatprep.subr.mxu0 %v168_v0  ;;  %133 = vmatprep.mubr.msk.f32.mxu0 %vm169_vm0, %v168_v0  ;;  %v27_v1 = vld [vmem:[%s212_s1] sm:$0x3]  ;;  %vm118_vm2 = vcmask 15360  }
  0x13   :  { %132 = vmatpush3.xpose.msk.msra.mxu0 %vm35_vm1, %v27_v1  ;;  %v125_v3 = vld [vmem:[%s213_s2] ss:$0 sm:$0xff] }
  0x16   :  { %134 = vmatmul.mubr.msk.f32.vlgmr.msra.gmra.mrb[0].mxu0 %vm35_vm1, %v26_v2 }
  0xe9   :  { %v108_v4 = vpop.f32.mrb[0].mxu0 }
  0xea   :  { %v109_v5 = vadd.f32 %v125_v3, %v108_v4  ;;  %v135_v6 = vpop.f32.mrb[1].mxu0 }
  0xec   :  { %v128_v7 = vmul.f32 -1.442695, %v109_v5 }
  0xee   :  { %139 = vpow2.f32 %v128_v7 }
  0xf8   :  { %v140_v8 = vpop.eup %139 }
  0xf9   :  { %v115_v9 = vadd.f32 1.0, %v140_v8 }
  0xfb   :  { %141 = vrcp.f32 %v115_v9 }
 0x105   :  { %v142_v10 = vpop.eup %141 }
 0x106   :  { %119 = vst.msk [vmem:[%s214_s3] sm:$0xff] %vm118_vm2, %v142_v10 }
 0x107   :  { %124 = vsyncpa [#allocation3], 1 }

</bundles_post_ra>
